<compile_context>
chip_gen: v7x
topology: tpu7x:2x2x1
jax: 0.10.0
libtpu: 0.0.40
codegen_flags: <defaults>
</compile_context>

<pallas_src>
import functools

import jax
import jax.numpy as jnp
import numpy as np
from jax import lax
from jax.experimental import pallas as pl
from jax.experimental.pallas import tpu as pltpu


def _rir_kernel(x_ref, w1a_ref, w2a_ref, w1b_ref, w2b_ref, mask_ref, o_ref,
                *, Cpad, W, N):
    # x: (Cpad, N) with N = B*H*W (batch folded into lanes).
    x = x_ref[...].astype(jnp.float32)

    # Flat source offsets for the 9 taps of a 3x3 / pad=1 conv.
    shifts = [(kh - 1) * W + (kw - 1) for kh in range(3) for kw in range(3)]

    def conv3x3(h, w2_all):
        # Channel-mix all 9 taps in a single MXU matmul (M=9*Cpad, K=Cpad,
        # N=B*HW), then shift each tap's (Cpad, N) slab spatially with an XLU
        # roll and zero invalid (out-of-image / cross-image-wrap) lanes with
        # the precomputed mask.  Channel mixing commutes with the purely
        # spatial shift/mask, so this equals the padded 3x3 convolution.
        y = jnp.dot(w2_all, h, preferred_element_type=jnp.float32)   # (9*Cpad, N)
        contribs = []
        for k, d in enumerate(shifts):
            yk = y[k * Cpad:(k + 1) * Cpad, :]      # 8-sublane aligned -> free
            if d == 0:
                contribs.append(yk)                 # center tap: always valid
            else:
                yk = pltpu.roll(yk, shift=(-d) % N, axis=1)
                contribs.append(yk * mask_ref[k])   # (Cpad, N) constant mask
        # Pairwise tree reduction (4 dependency levels instead of 8 serial adds).
        while len(contribs) > 1:
            nxt = [contribs[i] + contribs[i + 1]
                   for i in range(0, len(contribs) - 1, 2)]
            if len(contribs) % 2:
                nxt.append(contribs[-1])
            contribs = nxt
        return contribs[0]

    def res_block(inp, w1, w2_all):
        # conv1 (1x1) == (Cpad,Cpad) @ (Cpad,N) matmul, then ReLU.
        # TODO(synk): at C=4 the MXU is ~3% utilized; a VPU broadcast-FMA path
        # would shave the fill/drain, but the kernel is launch/DMA bound here.
        h = jnp.maximum(
            jnp.dot(w1, inp, preferred_element_type=jnp.float32), 0.0)
        out = conv3x3(h, w2_all)
        out = jnp.maximum(out, 0.0)                 # relu after conv2
        return jnp.maximum(out + inp, 0.0)          # residual add + final relu

    o1 = res_block(x, w1a_ref[...], w2a_ref[...])
    o2 = res_block(o1, w1b_ref[...], w2b_ref[...])
    o_ref[...] = (o2 + x).astype(o_ref.dtype)       # res2(res1(x)) + x


def rir_block_pallas(x_nchw, w1a, w2a, w1b, w2b):
    """x_nchw: (B, C, H, W). w1*: (C, C, 1, 1), w2*: (C, C, 3, 3) torch OIHW."""
    B, C, H, W = x_nchw.shape
    HW = H * W
    N = B * HW
    Cpad = ((C + 7) // 8) * 8                      # sublane-aligned channels

    # (B, C, H, W) -> (C, B*HW): fold batch into the lane axis, pad channels.
    x = jnp.transpose(x_nchw.reshape(B, C, HW), (1, 0, 2)).reshape(C, N)
    x = jnp.pad(x, ((0, Cpad - C), (0, 0)))

    # 1x1 conv: OIHW (C, C, 1, 1) -> (Cpad, Cpad) matmul LHS (zero padding).
    def w1_k(w):
        return jnp.pad(w[:, :, 0, 0], ((0, Cpad - C), (0, Cpad - C)))

    # 3x3 conv: OIHW (C, C, 3, 3) -> (9*Cpad, Cpad); row block k*Cpad + co
    # holds weight[co, :, kh, kw] with k = kh*3 + kw (matches per-tap slabs).
    def w2_k(w):
        wt = jnp.transpose(w, (2, 3, 0, 1)).reshape(9, C, C)
        wt = jnp.pad(wt, ((0, 0), (0, Cpad - C), (0, Cpad - C)))
        return wt.reshape(9 * Cpad, Cpad)

    # Host-precomputed tap-validity masks, per-image coordinates so they also
    # zero cross-image wrap introduced by the full-lane rolls.  Broadcast to
    # Cpad sublanes so the kernel does a plain elementwise multiply.
    p = np.arange(HW)
    h_idx, w_idx = p // W, p % W
    masks = np.zeros((9, Cpad, N), np.float32)
    for kh in range(3):
        for kw in range(3):
            valid = ((h_idx + kh - 1 >= 0) & (h_idx + kh - 1 < H) &
                     (w_idx + kw - 1 >= 0) & (w_idx + kw - 1 < W))
            masks[kh * 3 + kw] = np.tile(valid.astype(np.float32), B)[None, :]
    masks = jnp.asarray(masks)

    out = pl.pallas_call(
        functools.partial(_rir_kernel, Cpad=Cpad, W=W, N=N),
        out_shape=jax.ShapeDtypeStruct((Cpad, N), x_nchw.dtype),
        grid_spec=pltpu.PrefetchScalarGridSpec(
            num_scalar_prefetch=0,
            grid=(1,),                              # whole batch in one step
            in_specs=[
                pl.BlockSpec((Cpad, N), lambda i: (0, 0)),
                pl.BlockSpec((Cpad, Cpad), lambda i: (0, 0)),
                pl.BlockSpec((9 * Cpad, Cpad), lambda i: (0, 0)),
                pl.BlockSpec((Cpad, Cpad), lambda i: (0, 0)),
                pl.BlockSpec((9 * Cpad, Cpad), lambda i: (0, 0)),
                pl.BlockSpec((9, Cpad, N), lambda i: (0, 0, 0)),
            ],
            out_specs=pl.BlockSpec((Cpad, N), lambda i: (0, 0)),
        ),
        compiler_params=pltpu.CompilerParams(
            dimension_semantics=("arbitrary",)),
    )(x, w1_k(w1a), w2_k(w2a), w1_k(w1b), w2_k(w2b), masks)

    # (Cpad, B*HW) -> (B, C, H, W)
    out = out[:C, :].reshape(C, B, HW)
    return jnp.transpose(out, (1, 0, 2)).reshape(B, C, H, W)


# ---------------- pure-JAX reference (for correctness check) ----------------
def _conv2d_ref(x, w, padding):
    return lax.conv_general_dilated(
        x, w, window_strides=(1, 1), padding=padding,
        dimension_numbers=("NCHW", "OIHW", "NCHW"))


def _res_block_ref(x, w1, w2):
    out = jax.nn.relu(_conv2d_ref(x, w1, "VALID"))
    out = _conv2d_ref(out, w2, ((1, 1), (1, 1)))
    out = jax.nn.relu(out)
    out = out + x
    return jax.nn.relu(out)


def rir_block_ref(x, w1a, w2a, w1b, w2b):
    out = _res_block_ref(x, w1a, w2a)
    out = _res_block_ref(out, w1b, w2b)
    return out + x


if __name__ == "__main__":
    B, C, H, W = 2, 4, 16, 16          # in_channels == out_channels == 4

    key = jax.random.PRNGKey(0)
    kx, k1, k2, k3, k4 = jax.random.split(key, 5)

    x = jax.random.normal(kx, (B, C, H, W), dtype=jnp.float32)
    # conv weights, PyTorch OIHW layout, bias=False
    w1a = jax.random.normal(k1, (C, C, 1, 1), dtype=jnp.float32) * 0.3
    w2a = jax.random.normal(k2, (C, C, 3, 3), dtype=jnp.float32) * 0.1
    w1b = jax.random.normal(k3, (C, C, 1, 1), dtype=jnp.float32) * 0.3
    w2b = jax.random.normal(k4, (C, C, 3, 3), dtype=jnp.float32) * 0.1

    out = jax.block_until_ready(rir_block_pallas(x, w1a, w2a, w1b, w2b))
    ref = jax.block_until_ready(rir_block_ref(x, w1a, w2a, w1b, w2b))

    assert out.shape == (B, C, H, W), out.shape
    np.testing.assert_allclose(np.asarray(out), np.asarray(ref),
                               rtol=1e-4, atol=1e-4)
    print("KERNEL_OK")
</pallas_src>

<mosaic_0001>
module attributes {stable_mosaic.version = 11 : i64} {
  func.func @_rir_kernel(%arg0: i32, %arg1: memref<8x512xf32, #tpu.memory_space<vmem>>, %arg2: memref<8x8xf32, #tpu.memory_space<vmem>>, %arg3: memref<72x8xf32, #tpu.memory_space<vmem>>, %arg4: memref<8x8xf32, #tpu.memory_space<vmem>>, %arg5: memref<72x8xf32, #tpu.memory_space<vmem>>, %arg6: memref<9x8x512xf32, #tpu.memory_space<vmem>>, %arg7: memref<8x512xf32, #tpu.memory_space<vmem>>) attributes {dimension_semantics = [#tpu.dimension_semantics<arbitrary>], iteration_bounds = array<i64: 1>, scalar_prefetch = 0 : i64, scratch_operands = 0 : i64, tpu.core_type = #tpu.core_type<tc>, window_params = [{pipeline_mode = #tpu.pipeline_mode<synchronous>, transform_indices = @transform_0, window_bounds = array<i64: 8, 512>}, {pipeline_mode = #tpu.pipeline_mode<synchronous>, transform_indices = @transform_1, window_bounds = array<i64: 8, 8>}, {pipeline_mode = #tpu.pipeline_mode<synchronous>, transform_indices = @transform_2, window_bounds = array<i64: 72, 8>}, {pipeline_mode = #tpu.pipeline_mode<synchronous>, transform_indices = @transform_3, window_bounds = array<i64: 8, 8>}, {pipeline_mode = #tpu.pipeline_mode<synchronous>, transform_indices = @transform_4, window_bounds = array<i64: 72, 8>}, {pipeline_mode = #tpu.pipeline_mode<synchronous>, transform_indices = @transform_5, window_bounds = array<i64: 9, 8, 512>}, {pipeline_mode = #tpu.pipeline_mode<synchronous>, transform_indices = @transform_6, window_bounds = array<i64: 8, 512>}]} {
    %c0 = arith.constant 0 : index
    %c0_0 = arith.constant 0 : index
    %0 = vector.load %arg1[%c0, %c0_0] : memref<8x512xf32, #tpu.memory_space<vmem>>, vector<8x512xf32>
    %c0_1 = arith.constant 0 : index
    %c0_2 = arith.constant 0 : index
    %1 = vector.load %arg2[%c0_1, %c0_2] : memref<8x8xf32, #tpu.memory_space<vmem>>, vector<8x8xf32>
    %c0_3 = arith.constant 0 : index
    %c0_4 = arith.constant 0 : index
    %2 = vector.load %arg3[%c0_3, %c0_4] : memref<72x8xf32, #tpu.memory_space<vmem>>, vector<72x8xf32>
    %cst = arith.constant dense<0.000000e+00> : vector<8x512xf32>
    %3 = tpu.matmul %1, %0, %cst {dimension_numbers = #tpu.dot_dimension_numbers<[1], [0], [0], [1], [0, 0, 1, 1], [], []>} : vector<8x8xf32>, vector<8x512xf32>, vector<8x512xf32> -> vector<8x512xf32>
    %cst_5 = arith.constant 0.000000e+00 : f32
    %4 = vector.broadcast %cst_5 : f32 to vector<8x512xf32>
    %5 = arith.maximumf %3, %4 : vector<8x512xf32>
    %cst_6 = arith.constant dense<0.000000e+00> : vector<72x512xf32>
    %6 = tpu.matmul %2, %5, %cst_6 {dimension_numbers = #tpu.dot_dimension_numbers<[1], [0], [0], [1], [0, 0, 1, 1], [], []>} : vector<72x8xf32>, vector<8x512xf32>, vector<72x512xf32> -> vector<72x512xf32>
    %7 = vector.extract_strided_slice %6 {offsets = [0, 0], sizes = [8, 512], strides = [1, 1]} : vector<72x512xf32> to vector<8x512xf32>
    %c17_i32 = arith.constant 17 : i32
    %8 = tpu.dynamic_rotate %7 by %c17_i32 dim 1 : vector<8x512xf32>, i32 -> vector<8x512xf32>
    %c0_7 = arith.constant 0 : index
    %c0_8 = arith.constant 0 : index
    %c0_9 = arith.constant 0 : index
    %9 = vector.load %arg6[%c0_7, %c0_8, %c0_9] : memref<9x8x512xf32, #tpu.memory_space<vmem>>, vector<1x8x512xf32>
    %10 = vector.shape_cast %9 : vector<1x8x512xf32> to vector<8x512xf32>
    %11 = arith.mulf %8, %10 : vector<8x512xf32>
    %12 = vector.extract_strided_slice %6 {offsets = [8, 0], sizes = [8, 512], strides = [1, 1]} : vector<72x512xf32> to vector<8x512xf32>
    %c16_i32 = arith.constant 16 : i32
    %13 = tpu.dynamic_rotate %12 by %c16_i32 dim 1 : vector<8x512xf32>, i32 -> vector<8x512xf32>
    %c1 = arith.constant 1 : index
    %c0_10 = arith.constant 0 : index
    %c0_11 = arith.constant 0 : index
    %14 = vector.load %arg6[%c1, %c0_10, %c0_11] : memref<9x8x512xf32, #tpu.memory_space<vmem>>, vector<1x8x512xf32>
    %15 = vector.shape_cast %14 : vector<1x8x512xf32> to vector<8x512xf32>
    %16 = arith.mulf %13, %15 : vector<8x512xf32>
    %17 = vector.extract_strided_slice %6 {offsets = [16, 0], sizes = [8, 512], strides = [1, 1]} : vector<72x512xf32> to vector<8x512xf32>
    %c15_i32 = arith.constant 15 : i32
    %18 = tpu.dynamic_rotate %17 by %c15_i32 dim 1 : vector<8x512xf32>, i32 -> vector<8x512xf32>
    %c2 = arith.constant 2 : index
    %c0_12 = arith.constant 0 : index
    %c0_13 = arith.constant 0 : index
    %19 = vector.load %arg6[%c2, %c0_12, %c0_13] : memref<9x8x512xf32, #tpu.memory_space<vmem>>, vector<1x8x512xf32>
    %20 = vector.shape_cast %19 : vector<1x8x512xf32> to vector<8x512xf32>
    %21 = arith.mulf %18, %20 : vector<8x512xf32>
    %22 = vector.extract_strided_slice %6 {offsets = [24, 0], sizes = [8, 512], strides = [1, 1]} : vector<72x512xf32> to vector<8x512xf32>
    %c1_i32 = arith.constant 1 : i32
    %23 = tpu.dynamic_rotate %22 by %c1_i32 dim 1 : vector<8x512xf32>, i32 -> vector<8x512xf32>
    %c3 = arith.constant 3 : index
    %c0_14 = arith.constant 0 : index
    %c0_15 = arith.constant 0 : index
    %24 = vector.load %arg6[%c3, %c0_14, %c0_15] : memref<9x8x512xf32, #tpu.memory_space<vmem>>, vector<1x8x512xf32>
    %25 = vector.shape_cast %24 : vector<1x8x512xf32> to vector<8x512xf32>
    %26 = arith.mulf %23, %25 : vector<8x512xf32>
    %27 = vector.extract_strided_slice %6 {offsets = [32, 0], sizes = [8, 512], strides = [1, 1]} : vector<72x512xf32> to vector<8x512xf32>
    %28 = vector.extract_strided_slice %6 {offsets = [40, 0], sizes = [8, 512], strides = [1, 1]} : vector<72x512xf32> to vector<8x512xf32>
    %c511_i32 = arith.constant 511 : i32
    %29 = tpu.dynamic_rotate %28 by %c511_i32 dim 1 : vector<8x512xf32>, i32 -> vector<8x512xf32>
    %c5 = arith.constant 5 : index
    %c0_16 = arith.constant 0 : index
    %c0_17 = arith.constant 0 : index
    %30 = vector.load %arg6[%c5, %c0_16, %c0_17] : memref<9x8x512xf32, #tpu.memory_space<vmem>>, vector<1x8x512xf32>
    %31 = vector.shape_cast %30 : vector<1x8x512xf32> to vector<8x512xf32>
    %32 = arith.mulf %29, %31 : vector<8x512xf32>
    %33 = vector.extract_strided_slice %6 {offsets = [48, 0], sizes = [8, 512], strides = [1, 1]} : vector<72x512xf32> to vector<8x512xf32>
    %c497_i32 = arith.constant 497 : i32
    %34 = tpu.dynamic_rotate %33 by %c497_i32 dim 1 : vector<8x512xf32>, i32 -> vector<8x512xf32>
    %c6 = arith.constant 6 : index
    %c0_18 = arith.constant 0 : index
    %c0_19 = arith.constant 0 : index
    %35 = vector.load %arg6[%c6, %c0_18, %c0_19] : memref<9x8x512xf32, #tpu.memory_space<vmem>>, vector<1x8x512xf32>
    %36 = vector.shape_cast %35 : vector<1x8x512xf32> to vector<8x512xf32>
    %37 = arith.mulf %34, %36 : vector<8x512xf32>
    %38 = vector.extract_strided_slice %6 {offsets = [56, 0], sizes = [8, 512], strides = [1, 1]} : vector<72x512xf32> to vector<8x512xf32>
    %c496_i32 = arith.constant 496 : i32
    %39 = tpu.dynamic_rotate %38 by %c496_i32 dim 1 : vector<8x512xf32>, i32 -> vector<8x512xf32>
    %c7 = arith.constant 7 : index
    %c0_20 = arith.constant 0 : index
    %c0_21 = arith.constant 0 : index
    %40 = vector.load %arg6[%c7, %c0_20, %c0_21] : memref<9x8x512xf32, #tpu.memory_space<vmem>>, vector<1x8x512xf32>
    %41 = vector.shape_cast %40 : vector<1x8x512xf32> to vector<8x512xf32>
    %42 = arith.mulf %39, %41 : vector<8x512xf32>
    %43 = vector.extract_strided_slice %6 {offsets = [64, 0], sizes = [8, 512], strides = [1, 1]} : vector<72x512xf32> to vector<8x512xf32>
    %c495_i32 = arith.constant 495 : i32
    %44 = tpu.dynamic_rotate %43 by %c495_i32 dim 1 : vector<8x512xf32>, i32 -> vector<8x512xf32>
    %c8 = arith.constant 8 : index
    %c0_22 = arith.constant 0 : index
    %c0_23 = arith.constant 0 : index
    %45 = vector.load %arg6[%c8, %c0_22, %c0_23] : memref<9x8x512xf32, #tpu.memory_space<vmem>>, vector<1x8x512xf32>
    %46 = vector.shape_cast %45 : vector<1x8x512xf32> to vector<8x512xf32>
    %47 = arith.mulf %44, %46 : vector<8x512xf32>
    %48 = arith.addf %11, %16 : vector<8x512xf32>
    %49 = arith.addf %21, %26 : vector<8x512xf32>
    %50 = arith.addf %27, %32 : vector<8x512xf32>
    %51 = arith.addf %37, %42 : vector<8x512xf32>
    %52 = arith.addf %48, %49 : vector<8x512xf32>
    %53 = arith.addf %50, %51 : vector<8x512xf32>
    %54 = arith.addf %52, %53 : vector<8x512xf32>
    %55 = arith.addf %54, %47 : vector<8x512xf32>
    %cst_24 = arith.constant 0.000000e+00 : f32
    %56 = vector.broadcast %cst_24 : f32 to vector<8x512xf32>
    %57 = arith.maximumf %55, %56 : vector<8x512xf32>
    %58 = arith.addf %57, %0 : vector<8x512xf32>
    %cst_25 = arith.constant 0.000000e+00 : f32
    %59 = vector.broadcast %cst_25 : f32 to vector<8x512xf32>
    %60 = arith.maximumf %58, %59 : vector<8x512xf32>
    %c0_26 = arith.constant 0 : index
    %c0_27 = arith.constant 0 : index
    %61 = vector.load %arg4[%c0_26, %c0_27] : memref<8x8xf32, #tpu.memory_space<vmem>>, vector<8x8xf32>
    %c0_28 = arith.constant 0 : index
    %c0_29 = arith.constant 0 : index
    %62 = vector.load %arg5[%c0_28, %c0_29] : memref<72x8xf32, #tpu.memory_space<vmem>>, vector<72x8xf32>
    %cst_30 = arith.constant dense<0.000000e+00> : vector<8x512xf32>
    %63 = tpu.matmul %61, %60, %cst_30 {dimension_numbers = #tpu.dot_dimension_numbers<[1], [0], [0], [1], [0, 0, 1, 1], [], []>} : vector<8x8xf32>, vector<8x512xf32>, vector<8x512xf32> -> vector<8x512xf32>
    %cst_31 = arith.constant 0.000000e+00 : f32
    %64 = vector.broadcast %cst_31 : f32 to vector<8x512xf32>
    %65 = arith.maximumf %63, %64 : vector<8x512xf32>
    %cst_32 = arith.constant dense<0.000000e+00> : vector<72x512xf32>
    %66 = tpu.matmul %62, %65, %cst_32 {dimension_numbers = #tpu.dot_dimension_numbers<[1], [0], [0], [1], [0, 0, 1, 1], [], []>} : vector<72x8xf32>, vector<8x512xf32>, vector<72x512xf32> -> vector<72x512xf32>
    %67 = vector.extract_strided_slice %66 {offsets = [0, 0], sizes = [8, 512], strides = [1, 1]} : vector<72x512xf32> to vector<8x512xf32>
    %c17_i32_33 = arith.constant 17 : i32
    %68 = tpu.dynamic_rotate %67 by %c17_i32_33 dim 1 : vector<8x512xf32>, i32 -> vector<8x512xf32>
    %c0_34 = arith.constant 0 : index
    %c0_35 = arith.constant 0 : index
    %c0_36 = arith.constant 0 : index
    %69 = vector.load %arg6[%c0_34, %c0_35, %c0_36] : memref<9x8x512xf32, #tpu.memory_space<vmem>>, vector<1x8x512xf32>
    %70 = vector.shape_cast %69 : vector<1x8x512xf32> to vector<8x512xf32>
    %71 = arith.mulf %68, %70 : vector<8x512xf32>
    %72 = vector.extract_strided_slice %66 {offsets = [8, 0], sizes = [8, 512], strides = [1, 1]} : vector<72x512xf32> to vector<8x512xf32>
    %c16_i32_37 = arith.constant 16 : i32
    %73 = tpu.dynamic_rotate %72 by %c16_i32_37 dim 1 : vector<8x512xf32>, i32 -> vector<8x512xf32>
    %c1_38 = arith.constant 1 : index
    %c0_39 = arith.constant 0 : index
    %c0_40 = arith.constant 0 : index
    %74 = vector.load %arg6[%c1_38, %c0_39, %c0_40] : memref<9x8x512xf32, #tpu.memory_space<vmem>>, vector<1x8x512xf32>
    %75 = vector.shape_cast %74 : vector<1x8x512xf32> to vector<8x512xf32>
    %76 = arith.mulf %73, %75 : vector<8x512xf32>
    %77 = vector.extract_strided_slice %66 {offsets = [16, 0], sizes = [8, 512], strides = [1, 1]} : vector<72x512xf32> to vector<8x512xf32>
    %c15_i32_41 = arith.constant 15 : i32
    %78 = tpu.dynamic_rotate %77 by %c15_i32_41 dim 1 : vector<8x512xf32>, i32 -> vector<8x512xf32>
    %c2_42 = arith.constant 2 : index
    %c0_43 = arith.constant 0 : index
    %c0_44 = arith.constant 0 : index
    %79 = vector.load %arg6[%c2_42, %c0_43, %c0_44] : memref<9x8x512xf32, #tpu.memory_space<vmem>>, vector<1x8x512xf32>
    %80 = vector.shape_cast %79 : vector<1x8x512xf32> to vector<8x512xf32>
    %81 = arith.mulf %78, %80 : vector<8x512xf32>
    %82 = vector.extract_strided_slice %66 {offsets = [24, 0], sizes = [8, 512], strides = [1, 1]} : vector<72x512xf32> to vector<8x512xf32>
    %c1_i32_45 = arith.constant 1 : i32
    %83 = tpu.dynamic_rotate %82 by %c1_i32_45 dim 1 : vector<8x512xf32>, i32 -> vector<8x512xf32>
    %c3_46 = arith.constant 3 : index
    %c0_47 = arith.constant 0 : index
    %c0_48 = arith.constant 0 : index
    %84 = vector.load %arg6[%c3_46, %c0_47, %c0_48] : memref<9x8x512xf32, #tpu.memory_space<vmem>>, vector<1x8x512xf32>
    %85 = vector.shape_cast %84 : vector<1x8x512xf32> to vector<8x512xf32>
    %86 = arith.mulf %83, %85 : vector<8x512xf32>
    %87 = vector.extract_strided_slice %66 {offsets = [32, 0], sizes = [8, 512], strides = [1, 1]} : vector<72x512xf32> to vector<8x512xf32>
    %88 = vector.extract_strided_slice %66 {offsets = [40, 0], sizes = [8, 512], strides = [1, 1]} : vector<72x512xf32> to vector<8x512xf32>
    %c511_i32_49 = arith.constant 511 : i32
    %89 = tpu.dynamic_rotate %88 by %c511_i32_49 dim 1 : vector<8x512xf32>, i32 -> vector<8x512xf32>
    %c5_50 = arith.constant 5 : index
    %c0_51 = arith.constant 0 : index
    %c0_52 = arith.constant 0 : index
    %90 = vector.load %arg6[%c5_50, %c0_51, %c0_52] : memref<9x8x512xf32, #tpu.memory_space<vmem>>, vector<1x8x512xf32>
    %91 = vector.shape_cast %90 : vector<1x8x512xf32> to vector<8x512xf32>
    %92 = arith.mulf %89, %91 : vector<8x512xf32>
    %93 = vector.extract_strided_slice %66 {offsets = [48, 0], sizes = [8, 512], strides = [1, 1]} : vector<72x512xf32> to vector<8x512xf32>
    %c497_i32_53 = arith.constant 497 : i32
    %94 = tpu.dynamic_rotate %93 by %c497_i32_53 dim 1 : vector<8x512xf32>, i32 -> vector<8x512xf32>
    %c6_54 = arith.constant 6 : index
    %c0_55 = arith.constant 0 : index
    %c0_56 = arith.constant 0 : index
    %95 = vector.load %arg6[%c6_54, %c0_55, %c0_56] : memref<9x8x512xf32, #tpu.memory_space<vmem>>, vector<1x8x512xf32>
    %96 = vector.shape_cast %95 : vector<1x8x512xf32> to vector<8x512xf32>
    %97 = arith.mulf %94, %96 : vector<8x512xf32>
    %98 = vector.extract_strided_slice %66 {offsets = [56, 0], sizes = [8, 512], strides = [1, 1]} : vector<72x512xf32> to vector<8x512xf32>
    %c496_i32_57 = arith.constant 496 : i32
    %99 = tpu.dynamic_rotate %98 by %c496_i32_57 dim 1 : vector<8x512xf32>, i32 -> vector<8x512xf32>
    %c7_58 = arith.constant 7 : index
    %c0_59 = arith.constant 0 : index
    %c0_60 = arith.constant 0 : index
    %100 = vector.load %arg6[%c7_58, %c0_59, %c0_60] : memref<9x8x512xf32, #tpu.memory_space<vmem>>, vector<1x8x512xf32>
    %101 = vector.shape_cast %100 : vector<1x8x512xf32> to vector<8x512xf32>
    %102 = arith.mulf %99, %101 : vector<8x512xf32>
    %103 = vector.extract_strided_slice %66 {offsets = [64, 0], sizes = [8, 512], strides = [1, 1]} : vector<72x512xf32> to vector<8x512xf32>
    %c495_i32_61 = arith.constant 495 : i32
    %104 = tpu.dynamic_rotate %103 by %c495_i32_61 dim 1 : vector<8x512xf32>, i32 -> vector<8x512xf32>
    %c8_62 = arith.constant 8 : index
    %c0_63 = arith.constant 0 : index
    %c0_64 = arith.constant 0 : index
    %105 = vector.load %arg6[%c8_62, %c0_63, %c0_64] : memref<9x8x512xf32, #tpu.memory_space<vmem>>, vector<1x8x512xf32>
    %106 = vector.shape_cast %105 : vector<1x8x512xf32> to vector<8x512xf32>
    %107 = arith.mulf %104, %106 : vector<8x512xf32>
    %108 = arith.addf %71, %76 : vector<8x512xf32>
    %109 = arith.addf %81, %86 : vector<8x512xf32>
    %110 = arith.addf %87, %92 : vector<8x512xf32>
    %111 = arith.addf %97, %102 : vector<8x512xf32>
    %112 = arith.addf %108, %109 : vector<8x512xf32>
    %113 = arith.addf %110, %111 : vector<8x512xf32>
    %114 = arith.addf %112, %113 : vector<8x512xf32>
    %115 = arith.addf %114, %107 : vector<8x512xf32>
    %cst_65 = arith.constant 0.000000e+00 : f32
    %116 = vector.broadcast %cst_65 : f32 to vector<8x512xf32>
    %117 = arith.maximumf %115, %116 : vector<8x512xf32>
    %118 = arith.addf %117, %60 : vector<8x512xf32>
    %cst_66 = arith.constant 0.000000e+00 : f32
    %119 = vector.broadcast %cst_66 : f32 to vector<8x512xf32>
    %120 = arith.maximumf %118, %119 : vector<8x512xf32>
    %121 = arith.addf %120, %0 : vector<8x512xf32>
    %c0_67 = arith.constant 0 : index
    %c0_68 = arith.constant 0 : index
    %122 = vector.load %arg7[%c0_67, %c0_68] : memref<8x512xf32, #tpu.memory_space<vmem>>, vector<8x512xf32>
    tpu.vector_store %arg7[%c0_67, %c0_68], %121 {strides = array<i32>} : memref<8x512xf32, #tpu.memory_space<vmem>>, vector<8x512xf32>,
    return
  }
  func.func @transform_0(%arg0: i32) -> (i32, i32) {
    %c0_i32 = arith.constant 0 : i32
    %c0_i32_0 = arith.constant 0 : i32
    %c0_i32_1 = arith.constant 0 : i32
    return %c0_i32, %c0_i32_0 : i32, i32
  }
  func.func @transform_1(%arg0: i32) -> (i32, i32) {
    %c0_i32 = arith.constant 0 : i32
    %c0_i32_0 = arith.constant 0 : i32
    %c0_i32_1 = arith.constant 0 : i32
    return %c0_i32, %c0_i32_0 : i32, i32
  }
  func.func @transform_2(%arg0: i32) -> (i32, i32) {
    %c0_i32 = arith.constant 0 : i32
    %c0_i32_0 = arith.constant 0 : i32
    %c0_i32_1 = arith.constant 0 : i32
    return %c0_i32, %c0_i32_0 : i32, i32
  }
  func.func @transform_3(%arg0: i32) -> (i32, i32) {
    %c0_i32 = arith.constant 0 : i32
    %c0_i32_0 = arith.constant 0 : i32
    %c0_i32_1 = arith.constant 0 : i32
    return %c0_i32, %c0_i32_0 : i32, i32
  }
  func.func @transform_4(%arg0: i32) -> (i32, i32) {
    %c0_i32 = arith.constant 0 : i32
    %c0_i32_0 = arith.constant 0 : i32
    %c0_i32_1 = arith.constant 0 : i32
    return %c0_i32, %c0_i32_0 : i32, i32
  }
  func.func @transform_5(%arg0: i32) -> (i32, i32, i32) {
    %c0_i32 = arith.constant 0 : i32
    %c0_i32_0 = arith.constant 0 : i32
    %c0_i32_1 = arith.constant 0 : i32
    %c0_i32_2 = arith.constant 0 : i32
    return %c0_i32, %c0_i32_0, %c0_i32_1 : i32, i32, i32
  }
  func.func @transform_6(%arg0: i32) -> (i32, i32) {
    %c0_i32 = arith.constant 0 : i32
    %c0_i32_0 = arith.constant 0 : i32
    %c0_i32_1 = arith.constant 0 : i32
    return %c0_i32, %c0_i32_0 : i32, i32
  }
}

</mosaic_0001>

<bundles_post_ra>
// kernel: tpu_custom_call.1
= control target key start
LH: loop header
LB: loop body
LE: loop exit
PB: predicated region body
PF: predicated region fallthrough
CT: control target
= control target key end

     0   :  { %11 = vsyncpa [#allocation3], 0  ;;  %s2092_s0 = inlined_call_operand.vmem [shape: f32[8,512], index: 0, kind: input, shape index: {}]   ;;  %s2093_s1 = inlined_call_operand.vmem [shape: f32[8,8], index: 1, kind: input, shape index: {}]   ;;  %s2094_s2 = inlined_call_operand.vmem [shape: f32[72,8], index: 2, kind: input, shape index: {}]   ;;  %s2095_s3 = inlined_call_operand.vmem [shape: f32[8,8], index: 3, kind: input, shape index: {}]   ;;  %s2096_s4 = inlined_call_operand.vmem [shape: f32[72,8], index: 4, kind: input, shape index: {}]   ;;  %s2097_s5 = inlined_call_operand.hbm [shape: f32[9,8,512], index: 5, kind: input, shape index: {}]   ;;  %s2098_s6 = inlined_call_operand.hbm [shape: f32[8,512], index: 6, kind: output, shape index: {}]  }
   0x1   :  { %12 = vsyncpa [#allocation4], 0  ;;  %s1412_s21 = smov [#allocation2]   ;;  %s1364_s25 = scalar_lea.hbm %s2097_s5, 4608 }
   0x2   :  { %s28_s22 = sshll.u32 %s1412_s21, 4  ;;  %p1365_p0 = scmp.ne.s32.totalorder %s2097_s5, %s1364_s25  ;;  %s29_s22 = int_to_ptr.vmem [resolvable:$true] %s28_s22 }
   0x3   :  { %p1368_p1 = scmp.lt.u32.totalorder %s1364_s25, %s2097_s5 }
   0x5   :  { %p1370_p2 = pnand %p1368_p1, %p1365_p0 }
   0x7   :  { %1373 = shalt.err (!%p1370_p2)
}
   0x8   :  { %s1374_s30 = scalar_lea.vmem %s29_s22, 4608  ;;  %p1379_p4 = scmp.lt.s32.totalorder %s29_s22, %s29_s22 }
   0x9   :  { %p1375_p3 = scmp.ne.s32.totalorder %s29_s22, %s1374_s30  ;;  %p1380_p5 = scmp.lt.s32.totalorder %s1374_s30, %s1374_s30 }
   0xb   :  { %p1381_p6 = por %p1380_p5, %p1379_p4 }
   0xd   :  { %p1382_p7 = pnand %p1381_p6, %p1375_p3 }
   0xf   :  { %1385 = shalt.err (!%p1382_p7)
}
  0x10   :  { %s1413_s7 = smov 512   ;;  %s1414_s8 = smov 32  }
  0x11   :  { %34 = dma.hbm_to_vmem [thread:$0]  %s2097_s5, 4608, %s29_s22, [#allocation3], %s1413_s7, %s1413_s7, %s1414_s8  }
  0x12   :  { %1408 = dma.done.wait [#allocation3], 4608  }
  0x13   :  { %1409 = vsyncadd [#allocation3], 4294962688  ;;  %v2099_v0 = vmov 0.0   ;;  %v1477_v1 = vld [vmem:[%s2092_s0 + $0x8] sm:$0xff]  ;;  %v1482_v2 = vld [vmem:[%s2092_s0 + $0x18] sm:$0xff]  ;;  %vm52_vm0 = vcmask 64512  }
  0x14   :  { %120 = vmatprep.mubr.f32.mxu0 %v2099_v0  ;;  %191 = vmatprep.mubr.f32.mxu1 %v2099_v0  ;;  %v1487_v3 = vld [vmem:[%s2092_s0] sm:$0xff]  ;;  %v1494_v4 = vld [vmem:[%s2092_s0 + $0x10] sm:$0xff]  ;;  %v44_v15 = vld [vmem:[%s2094_s2 + $0x8] sm:$0xff]  ;;  %s1416_s13 = smov 17   ;;  %s1418_s14 = smov 15  }
  0x15   :  { %56 = vmatprep.subr.mxu0 %v1477_v1  ;;  %127 = vmatprep.subr.mxu1 %v1482_v2  ;;  %v42_v5 = vld [vmem:[%s2093_s1] sm:$0xff]  ;;  %v45_v16 = vld [vmem:[%s2094_s2 + $0x10] sm:$0xff]  ;;  %v46_v17 = vld [vmem:[%s2094_s2 + $0x18] sm:$0xff]  ;;  %s1419_s15 = smov 1   ;;  %s1420_s16 = smov 127  }
  0x16   :  { %57 = vmatpush1.msra.mxu0 %v1487_v3  ;;  %128 = vmatpush1.msra.mxu1 %v1494_v4  ;;  %v43_v14 = vld [vmem:[%s2094_s2] sm:$0xff]  ;;  %v48_v19 = vld [vmem:[%s2094_s2 + $0x28] sm:$0xff]  ;;  %v49_v20 = vld [vmem:[%s2094_s2 + $0x30] sm:$0xff]  ;;  %s1421_s5 = smov 113   ;;  %s1422_s17 = smov 112  }
  0x17   :  { %1307 = vmatmul.mubr.msk.f32.vlgmr.msra.gmra.mrb[0].mxu0 %vm52_vm0, %v42_v5  ;;  %1308 = vmatmul.mubr.msk.f32.vlgmr.msra.gmra.mrb[0].mxu1 %vm52_vm0, %v42_v5  ;;  %v47_v18 = vld [vmem:[%s2094_s2 + $0x20] sm:$0xff]  ;;  %v50_v21 = vld [vmem:[%s2094_s2 + $0x38] sm:$0xff]  ;;  %s1423_s18 = smov 111  }
  0x18   :  { %293 = vmatprep.mubr.f32.mxu0 %v2099_v0  ;;  %412 = vmatprep.mubr.f32.mxu1 %v2099_v0  ;;  %v51_v22 = vld [vmem:[%s2094_s2 + $0x40] sm:$0xff]  ;;  %s1417_s2 = smov 16  }
  0xea   :  { %v122_v6 = vpop.f32.mrb[0].mxu0  ;;  %v193_v7 = vpop.f32.mrb[0].mxu1 }
  0xeb   :  { %v200_v8 = vmax.f32 %v193_v7, 0.0  ;;  %v124_v9 = vpop.f32.mrb[1].mxu0  ;;  %v195_v10 = vpop.f32.mrb[1].mxu1  ;;  %v198_v13 = vmax.f32 %v122_v6, 0.0 }
  0xec   :  { %v199_v11 = vmax.f32 %v124_v9, 0.0  ;;  %v201_v12 = vmax.f32 %v195_v10, 0.0 }
  0xee   :  { %229 = vmatprep.subr.mxu0 %v199_v11  ;;  %348 = vmatprep.subr.mxu1 %v201_v12 }
  0xef   :  { %230 = vmatpush1.msra.mxu0 %v198_v13  ;;  %349 = vmatpush1.msra.mxu1 %v200_v8 }
  0xf0   :  { %1309 = vmatmul.mubr.msk.f32.vlgmr.msra.gmra.mrb[2].mxu0 %vm52_vm0, %v43_v14  ;;  %1318 = vmatmul.mubr.msk.f32.vlgmr.msra.gmra.mrb[2].mxu1 %vm52_vm0, %v43_v14  ;;  %v475_v14 = vlaneseq }
  0xf1   :  { %299 = vmatprep.mubr.f32.mxu0 %v2099_v0  ;;  %418 = vmatprep.mubr.f32.mxu1 %v2099_v0 }
  0xf4   :  { %1310 = vmatmul.mubr.msk.f32.gmra.mrb[4].mxu0 %vm52_vm0, %v44_v15  ;;  %1319 = vmatmul.mubr.msk.f32.gmra.mrb[4].mxu1 %vm52_vm0, %v44_v15 }
  0xf5   :  { %305 = vmatprep.mubr.f32.mxu0 %v2099_v0  ;;  %424 = vmatprep.mubr.f32.mxu1 %v2099_v0 }
  0xf8   :  { %1311 = vmatmul.mubr.msk.f32.gmra.mrb[6].mxu0 %vm52_vm0, %v45_v16  ;;  %1320 = vmatmul.mubr.msk.f32.gmra.mrb[6].mxu1 %vm52_vm0, %v45_v16 }
  0xf9   :  { %311 = vmatprep.mubr.f32.mxu0 %v2099_v0  ;;  %430 = vmatprep.mubr.f32.mxu1 %v2099_v0 }
  0xfc   :  { %1312 = vmatmul.mubr.msk.f32.gmra.mrb[8].mxu0 %vm52_vm0, %v46_v17  ;;  %1321 = vmatmul.mubr.msk.f32.gmra.mrb[8].mxu1 %vm52_vm0, %v46_v17  ;;  %v1612_v17 = vand.u32 127, %v475_v14 }
  0xfd   :  { %317 = vmatprep.mubr.f32.mxu0 %v2099_v0  ;;  %436 = vmatprep.mubr.f32.mxu1 %v2099_v0 }
  0xfe   :  { %vm498_vm1 = vcmp.lt.s32.totalorder %v1612_v17, 16  ;;  %vm477_vm2 = vcmp.lt.s32.totalorder %v1612_v17, 17  ;;  %vm542_vm3 = vcmp.lt.s32.totalorder %v1612_v17, 1  ;;  %vm520_vm4 = vcmp.lt.s32.totalorder %v1612_v17, 15 }
  0xff   :  { %vm564_vm5 = vcmp.lt.s32.totalorder %v1612_v17, 127  ;;  %vm586_vm6 = vcmp.lt.s32.totalorder %v1612_v17, 113  ;;  %vm608_vm7 = vcmp.lt.s32.totalorder %v1612_v17, 112  ;;  %vm630_vm8 = vcmp.lt.s32.totalorder %v1612_v17, 111 }
 0x100   :  { %1313 = vmatmul.mubr.msk.f32.gmra.mrb[10].mxu0 %vm52_vm0, %v47_v18  ;;  %1322 = vmatmul.mubr.msk.f32.gmra.mrb[10].mxu1 %vm52_vm0, %v47_v18 }
 0x101   :  { %323 = vmatprep.mubr.f32.mxu0 %v2099_v0  ;;  %442 = vmatprep.mubr.f32.mxu1 %v2099_v0 }
 0x104   :  { %1314 = vmatmul.mubr.msk.f32.gmra.mrb[12].mxu0 %vm52_vm0, %v48_v19  ;;  %1323 = vmatmul.mubr.msk.f32.gmra.mrb[12].mxu1 %vm52_vm0, %v48_v19 }
 0x105   :  { %329 = vmatprep.mubr.f32.mxu0 %v2099_v0  ;;  %448 = vmatprep.mubr.f32.mxu1 %v2099_v0 }
 0x108   :  { %1315 = vmatmul.mubr.msk.f32.gmra.mrb[14].mxu0 %vm52_vm0, %v49_v20  ;;  %1324 = vmatmul.mubr.msk.f32.gmra.mrb[14].mxu1 %vm52_vm0, %v49_v20  ;;  %v1620_v20 = vld [vmem:[#allocation2 + $0x28] sm:$0xff] }
 0x109   :  { %335 = vmatprep.mubr.f32.mxu0 %v2099_v0  ;;  %454 = vmatprep.mubr.f32.mxu1 %v2099_v0 }
 0x10c   :  { %1316 = vmatmul.mubr.msk.f32.gmra.mrb[16].mxu0 %vm52_vm0, %v50_v21  ;;  %1325 = vmatmul.mubr.msk.f32.gmra.mrb[16].mxu1 %vm52_vm0, %v50_v21 }
 0x10d   :  { %341 = vmatprep.mubr.f32.mxu0 %v2099_v0  ;;  %460 = vmatprep.mubr.f32.mxu1 %v2099_v0 }
 0x110   :  { %1317 = vmatmul.mubr.msk.f32.gmra.mrb[18].mxu0 %vm52_vm0, %v51_v22  ;;  %1326 = vmatmul.mubr.msk.f32.gmra.mrb[18].mxu1 %vm52_vm0, %v51_v22 }
 0x111   :  { %765 = vmatprep.mubr.f32.mxu0 %v2099_v0  ;;  %836 = vmatprep.mubr.f32.mxu1 %v2099_v0  ;;  %v1767_v0 = vld [vmem:[#allocation2 + $0xd8] sm:$0xff] }
 0x112   :  { %2120 = vst [vmem:[#allocation14_spill] sm:$0xff] %v1767_v0 }
 0x1c3   :  { %v295_v23 = vpop.f32.mrb[2].mxu0  ;;  %v414_v24 = vpop.f32.mrb[2].mxu1 }
 0x1c4   :  { %471 = vrot.lane.b32.xlu1 %v414_v24, %s1416_s13  ;;  %467 = vrot.lane.b32.xlu0 %v295_v23, %s1416_s13  ;;  %v297_v25 = vpop.f32.mrb[3].mxu0  ;;  %v416_v26 = vpop.f32.mrb[3].mxu1  ;;  %v1628_v24 = vld [vmem:[#allocation2 + $0x8] sm:$0xff] }
 0x1c7   :  { %v301_v27 = vpop.f32.mrb[4].mxu0  ;;  %v420_v28 = vpop.f32.mrb[4].mxu1 }
 0x1c8   :  { %473 = vrot.lane.b32.xlu1 %v416_v26, %s1416_s13  ;;  %469 = vrot.lane.b32.xlu0 %v297_v25, %s1416_s13  ;;  %v303_v29 = vpop.f32.mrb[5].mxu0  ;;  %v422_v30 = vpop.f32.mrb[5].mxu1  ;;  %v1633_v26 = vld [vmem:[#allocation2] sm:$0xff] }
 0x1cb   :  { %v307_v31 = vpop.f32.mrb[6].mxu0  ;;  %v426_v32 = vpop.f32.mrb[6].mxu1 }
 0x1cc   :  { %490 = vrot.lane.b32.xlu0 %v301_v27, %s1417_s2  ;;  %492 = vrot.lane.b32.xlu1 %v303_v29, %s1417_s2  ;;  %v309_v33 = vpop.f32.mrb[7].mxu0  ;;  %v428_v34 = vpop.f32.mrb[7].mxu1  ;;  %v1638_v29 = vld [vmem:[#allocation2 + $0x30] sm:$0xff] }
 0x1cf   :  { %v313_v35 = vpop.f32.mrb[8].mxu0  ;;  %v432_v36 = vpop.f32.mrb[8].mxu1 }
 0x1d0   :  { %494 = vrot.lane.b32.xlu0 %v420_v28, %s1417_s2  ;;  %496 = vrot.lane.b32.xlu1 %v422_v30, %s1417_s2  ;;  %v315_v37 = vpop.f32.mrb[9].mxu0  ;;  %v434_v38 = vpop.f32.mrb[9].mxu1 }
 0x1d3   :  { %v1576_v39 = vpop.f32.mrb[10].mxu0  ;;  %v1578_v40 = vpop.f32.mrb[10].mxu1 }
 0x1d4   :  { %512 = vrot.lane.b32.xlu0 %v307_v31, %s1418_s14  ;;  %514 = vrot.lane.b32.xlu1 %v309_v33, %s1418_s14  ;;  %v1582_v41 = vpop.f32.mrb[11].mxu0  ;;  %v1584_v42 = vpop.f32.mrb[11].mxu1  ;;  %v1642_v31 = vld [vmem:[#allocation2 + $0x20] sm:$0xff]  ;;  %v1646_v33 = vld [vmem:[#allocation2 + $0x18] sm:$0xff] }
 0x1d7   :  { %v325_v43 = vpop.f32.mrb[12].mxu0  ;;  %v444_v44 = vpop.f32.mrb[12].mxu1 }
 0x1d8   :  { %516 = vrot.lane.b32.xlu0 %v426_v32, %s1418_s14  ;;  %518 = vrot.lane.b32.xlu1 %v428_v34, %s1418_s14  ;;  %v327_v45 = vpop.f32.mrb[13].mxu0  ;;  %v446_v46 = vpop.f32.mrb[13].mxu1 }
 0x1db   :  { %v331_v47 = vpop.f32.mrb[14].mxu0  ;;  %v450_v48 = vpop.f32.mrb[14].mxu1 }
 0x1dc   :  { %534 = vrot.lane.b32.xlu0 %v313_v35, %s1419_s15  ;;  %536 = vrot.lane.b32.xlu1 %v315_v37, %s1419_s15  ;;  %v333_v49 = vpop.f32.mrb[15].mxu0  ;;  %v452_v50 = vpop.f32.mrb[15].mxu1  ;;  %v1650_v35 = vld [vmem:[#allocation2 + $0x10] sm:$0xff] }
 0x1df   :  { %v337_v51 = vpop.f32.mrb[16].mxu0  ;;  %v456_v52 = vpop.f32.mrb[16].mxu1 }
 0x1e0   :  { %538 = vrot.lane.b32.xlu0 %v432_v36, %s1419_s15  ;;  %540 = vrot.lane.b32.xlu1 %v434_v38, %s1419_s15  ;;  %v339_v53 = vpop.f32.mrb[17].mxu0  ;;  %v458_v54 = vpop.f32.mrb[17].mxu1 }
 0x1e3   :  { %v343_v55 = vpop.f32.mrb[18].mxu0  ;;  %v462_v56 = vpop.f32.mrb[18].mxu1 }
 0x1e4   :  { %556 = vrot.lane.b32.xlu0 %v325_v43, %s1420_s16  ;;  %558 = vrot.lane.b32.xlu1 %v327_v45, %s1420_s16  ;;  %v345_v57 = vpop.f32.mrb[19].mxu0  ;;  %v464_v58 = vpop.f32.mrb[19].mxu1 }
 0x1e8   :  { %560 = vrot.lane.b32.xlu0 %v444_v44, %s1420_s16  ;;  %562 = vrot.lane.b32.xlu1 %v446_v46, %s1420_s16 }
 0x1ec   :  { %578 = vrot.lane.b32.xlu0 %v331_v47, %s1421_s5  ;;  %580 = vrot.lane.b32.xlu1 %v333_v49, %s1421_s5  ;;  %v1664_v47 = vld [vmem:[#allocation2 + $0x68] sm:$0xff] }
 0x1f0   :  { %582 = vrot.lane.b32.xlu0 %v450_v48, %s1421_s5  ;;  %584 = vrot.lane.b32.xlu1 %v452_v50, %s1421_s5 }
 0x1f4   :  { %600 = vrot.lane.b32.xlu0 %v337_v51, %s1422_s17  ;;  %602 = vrot.lane.b32.xlu1 %v339_v53, %s1422_s17 }
 0x1f8   :  { %604 = vrot.lane.b32.xlu0 %v456_v52, %s1422_s17  ;;  %606 = vrot.lane.b32.xlu1 %v458_v54, %s1422_s17  ;;  %v1674_v52 = vld [vmem:[#allocation2 + $0x38] sm:$0xff]  ;;  %v1678_v54 = vld [vmem:[#allocation2 + $0x48] sm:$0xff] }
 0x1fc   :  { %622 = vrot.lane.b32.xlu0 %v343_v55, %s1423_s18  ;;  %624 = vrot.lane.b32.xlu1 %v345_v57, %s1423_s18 }
 0x200   :  { %626 = vrot.lane.b32.xlu0 %v462_v56, %s1423_s18  ;;  %628 = vrot.lane.b32.xlu1 %v464_v58, %s1423_s18  ;;  %v1682_v56 = vld [vmem:[#allocation2 + $0x50] sm:$0xff]  ;;  %v1686_v58 = vld [vmem:[#allocation2 + $0x40] sm:$0xff] }
 0x236   :  { %v472_v59 = vpop.permute.xlu1 %471  ;;  %v468_v60 = vpop.permute.xlu0 %467 }
 0x23a   :  { %v474_v61 = vpop.permute.xlu1 %473  ;;  %v470_v62 = vpop.permute.xlu0 %469 }
 0x23b   :  { %v480_v25 = vsel %vm477_vm2, %v468_v60, %v470_v62  ;;  %v481_v27 = vsel %vm477_vm2, %v474_v61, %v468_v60  ;;  %v478_v34 = vsel %vm477_vm2, %v472_v59, %v474_v61  ;;  %v479_v36 = vsel %vm477_vm2, %v470_v62, %v472_v59  ;;  %v1690_v60 = vld [vmem:[#allocation2 + $0x70] sm:$0xff]  ;;  %v1695_v62 = vld [vmem:[#allocation2 + $0x58] sm:$0xff] }
 0x23c   :  { %v487_v37 = vmul.f32 %v1628_v24, %v480_v25  ;;  %v486_v44 = vmul.f32 %v1633_v26, %v481_v27  ;;  %v1669_v49 = vmul.f32 %v1646_v33, %v478_v34  ;;  %v488_v50 = vmul.f32 %v1650_v35, %v479_v36  ;;  %2114 = vst [vmem:[#allocation8_spill] sm:$0xff] %v1695_v62  ;;  %v1716_v25 = vld [vmem:[#allocation2 + $0x78] sm:$0xff] }
 0x23d   :  { %2116 = vst [vmem:[#allocation10_spill] sm:$0xff] %v1716_v25 }
 0x23e   :  { %v491_v63 = vpop.permute.xlu0 %490  ;;  %v493_v5 = vpop.permute.xlu1 %492 }
 0x23f   :  { %v501_v21 = vsel %vm498_vm1, %v491_v63, %v493_v5 }
 0x240   :  { %v509_v28 = vmul.f32 %v1620_v20, %v501_v21 }
 0x242   :  { %v495_v6 = vpop.permute.xlu0 %494  ;;  %v497_v7 = vpop.permute.xlu1 %496  ;;  %v1672_v51 = vadd.f32 %v509_v28, %v487_v37 }
 0x243   :  { %v500_v30 = vsel %vm498_vm1, %v493_v5, %v495_v6  ;;  %v502_v32 = vsel %vm498_vm1, %v497_v7, %v491_v63  ;;  %v499_v53 = vsel %vm498_vm1, %v495_v6, %v497_v7  ;;  %v1700_v6 = vld [vmem:[#allocation2 + $0x60] sm:$0xff] }
 0x244   :  { %v510_v45 = vmul.f32 %v1638_v29, %v500_v30  ;;  %v508_v46 = vmul.f32 %v1642_v31, %v502_v32 }
 0x246   :  { %v513_v8 = vpop.permute.xlu0 %512  ;;  %v515_v9 = vpop.permute.xlu1 %514  ;;  %v1711_v21 = vadd.f32 %v510_v45, %v488_v50 }
 0x247   :  { %v523_v55 = vsel %vm520_vm4, %v513_v8, %v515_v9 }
 0x248   :  { %v531_v27 = vmul.f32 %v1678_v54, %v523_v55 }
 0x24a   :  { %v517_v10 = vpop.permute.xlu0 %516  ;;  %v519_v11 = vpop.permute.xlu1 %518 }
 0x24b   :  { %v522_v57 = vsel %vm520_vm4, %v515_v9, %v517_v10  ;;  %v524_v59 = vsel %vm520_vm4, %v519_v11, %v513_v8  ;;  %v521_v63 = vsel %vm520_vm4, %v517_v10, %v519_v11  ;;  %v1705_v8 = vld [vmem:[#allocation2 + $0xa0] sm:$0xff]  ;;  %v1714_v10 = vmul.f32 %v1674_v52, %v499_v53  ;;  %v1744_v53 = vld [vmem:[#allocation2 + $0xb0] sm:$0xff] }
 0x24c   :  { %2115 = vst [vmem:[#allocation9_spill] sm:$0xff] %v1705_v8  ;;  %v644_v11 = vadd.f32 %v508_v46, %v486_v44  ;;  %v532_v28 = vmul.f32 %v1682_v56, %v522_v57  ;;  %v530_v30 = vmul.f32 %v1686_v58, %v524_v59  ;;  %v533_v34 = vmul.f32 %v1695_v62, %v521_v63  ;;  %v1730_v44 = vld [vmem:[#allocation2 + $0xc0] sm:$0xff]  ;;  %v1776_v62 = vld [vmem:[#allocation2 + $0xe8] sm:$0xff] }
 0x24d   :  { %2117 = vst [vmem:[#allocation11_spill] sm:$0xff] %v1730_v44 }
 0x24e   :  { %v535_v12 = vpop.permute.xlu0 %534  ;;  %v537_v13 = vpop.permute.xlu1 %536 }
 0x24f   :  { %v545_v48 = vsel %vm542_vm3, %v535_v12, %v537_v13 }
 0x250   :  { %v553_v5 = vmul.f32 %v1664_v47, %v545_v48  ;;  %v1738_v48 = vld [vmem:[#allocation2 + $0xa8] sm:$0xff] }
 0x252   :  { %v1608_v15 = vpop.permute.xlu0 %538  ;;  %v1610_v16 = vpop.permute.xlu1 %540  ;;  %v649_v45 = vadd.f32 %v553_v5, %v531_v27  ;;  %v1756_v5 = vld [vmem:[#allocation2 + $0xc8] sm:$0xff] }
 0x253   :  { %v544_v61 = vsel %vm542_vm3, %v537_v13, %v1608_v15  ;;  %v546_v7 = vsel %vm542_vm3, %v1610_v16, %v535_v12  ;;  %v543_v12 = vsel %vm542_vm3, %v1608_v15, %v1610_v16  ;;  %v1735_v16 = vld [vmem:[#allocation2 + $0xe0] sm:$0xff]  ;;  %2118 = vst [vmem:[#allocation12_spill] sm:$0xff] %v1756_v5 }
 0x254   :  { %v554_v32 = vmul.f32 %v1690_v60, %v544_v61  ;;  %v552_v36 = vmul.f32 %v1700_v6, %v546_v7  ;;  %v555_v46 = vmul.f32 %v1716_v25, %v543_v12  ;;  %v1750_v61 = vld [vmem:[#allocation2 + $0xb8] sm:$0xff]  ;;  %v1760_v7 = vld [vmem:[#allocation2 + $0xd0] sm:$0xff] }
 0x255   :  { %2119 = vst [vmem:[#allocation13_spill] sm:$0xff] %v1760_v7 }
 0x256   :  { %v1615_v18 = vpop.permute.xlu0 %556  ;;  %v1617_v19 = vpop.permute.xlu1 %558  ;;  %v650_v12 = vadd.f32 %v554_v32, %v532_v28  ;;  %v1778_v28 = vld [vmem:[#allocation2 + $0xf0] sm:$0xff]  ;;  %v1780_v32 = vld [vmem:[#allocation2 + $0xf8] sm:$0xff] }
 0x257   :  { %v567_v9 = vsel %vm564_vm5, %v1615_v18, %v1617_v19 }
 0x258   :  { %v574_v37 = vmul.f32 %v1705_v8, %v567_v9 }
 0x25a   :  { %v1624_v22 = vpop.permute.xlu0 %560  ;;  %v1626_v23 = vpop.permute.xlu1 %562  ;;  %v652_v25 = vadd.f32 %v574_v37, %v1576_v39 }
 0x25b   :  { %v566_v50 = vsel %vm564_vm5, %v1617_v19, %v1624_v22  ;;  %v565_v55 = vsel %vm564_vm5, %v1624_v22, %v1626_v23  ;;  %v568_v63 = vsel %vm564_vm5, %v1626_v23, %v1615_v18 }
 0x25c   :  { %v575_v8 = vmul.f32 %v1738_v48, %v566_v50 }
 0x25e   :  { %v1657_v38 = vpop.permute.xlu0 %578  ;;  %v581_v43 = vpop.permute.xlu1 %580 }
 0x25f   :  { %v589_v15 = vsel %vm586_vm6, %v1657_v38, %v581_v43 }
 0x260   :  { %v596_v27 = vmul.f32 %v1730_v44, %v589_v15  ;;  %v577_v15 = vmul.f32 %v1750_v61, %v568_v63 }
 0x262   :  { %v583_v13 = vpop.permute.xlu0 %582  ;;  %v585_v14 = vpop.permute.xlu1 %584 }
 0x263   :  { %v588_v19 = vsel %vm586_vm6, %v581_v43, %v583_v13  ;;  %v587_v9 = vsel %vm586_vm6, %v583_v13, %v585_v14  ;;  %v590_v18 = vsel %vm586_vm6, %v585_v14, %v1657_v38  ;;  %v648_v43 = vadd.f32 %v552_v36, %v530_v30 }
 0x264   :  { %v576_v13 = vmul.f32 %v1744_v53, %v565_v55  ;;  %v597_v44 = vmul.f32 %v1756_v5, %v588_v19  ;;  %v598_v38 = vmul.f32 %v1760_v7, %v587_v9  ;;  %v599_v39 = vmul.f32 %v1767_v0, %v590_v18 }
 0x265   :  { %v653_v18 = vadd.f32 %v575_v8, %v1582_v41 }
 0x266   :  { %v601_v57 = vpop.permute.xlu0 %600  ;;  %v603_v59 = vpop.permute.xlu1 %602  ;;  %v654_v0 = vadd.f32 %v576_v13, %v1578_v40  ;;  %v1811_v13 = vld [vmem:[#allocation2 + $0x118] sm:$0xff] }
 0x267   :  { %v611_v22 = vsel %vm608_vm7, %v601_v57, %v603_v59 }
 0x268   :  { %v618_v23 = vmul.f32 %v1735_v16, %v611_v22 }
 0x26a   :  { %v656_v14 = vadd.f32 %v618_v23, %v596_v27  ;;  %v605_v30 = vpop.permute.xlu0 %604  ;;  %v607_v36 = vpop.permute.xlu1 %606  ;;  %v651_v27 = vadd.f32 %v555_v46, %v533_v34  ;;  %v660_v23 = vadd.f32 %v648_v43, %v644_v11  ;;  %v1809_v43 = vld [vmem:[#allocation2 + $0x110] sm:$0xff] }
 0x26b   :  { %v610_v37 = vsel %vm608_vm7, %v603_v59, %v605_v30  ;;  %v609_v50 = vsel %vm608_vm7, %v605_v30, %v607_v36  ;;  %v612_v55 = vsel %vm608_vm7, %v607_v36, %v601_v57  ;;  %v1797_v59 = vld [vmem:[#allocation2 + $0x100] sm:$0xff]  ;;  %v655_v30 = vadd.f32 %v577_v15, %v1584_v42 }
 0x26c   :  { %v664_v22 = vadd.f32 %v656_v14, %v652_v25  ;;  %v619_v63 = vmul.f32 %v1776_v62, %v610_v37  ;;  %v620_v19 = vmul.f32 %v1778_v28, %v609_v50  ;;  %v621_v9 = vmul.f32 %v1780_v32, %v612_v55 }
 0x26d   :  { %v647_v36 = vadd.f32 %v1714_v10, %v1669_v49  ;;  %v661_v37 = vadd.f32 %v649_v45, %v1672_v51  ;;  %v662_v42 = vadd.f32 %v650_v12, %v1711_v21 }
 0x26e   :  { %v657_v7 = vadd.f32 %v619_v63, %v597_v44  ;;  %v658_v5 = vadd.f32 %v620_v19, %v598_v38  ;;  %v659_v57 = vadd.f32 %v621_v9, %v599_v39  ;;  %v623_v25 = vpop.permute.xlu0 %622  ;;  %v625_v14 = vpop.permute.xlu1 %624  ;;  %v668_v34 = vadd.f32 %v664_v22, %v660_v23  ;;  %v1807_v44 = vld [vmem:[#allocation2 + $0x108] sm:$0xff] }
 0x26f   :  { %v633_v41 = vsel %vm630_vm8, %v623_v25, %v625_v14  ;;  %v663_v49 = vadd.f32 %v651_v27, %v647_v36 }
 0x270   :  { %v665_v8 = vadd.f32 %v657_v7, %v653_v18  ;;  %v666_v40 = vadd.f32 %v658_v5, %v654_v0  ;;  %v667_v11 = vadd.f32 %v659_v57, %v655_v30  ;;  %v640_v46 = vmul.f32 %v1797_v59, %v633_v41 }
 0x272   :  { %v672_v10 = vadd.f32 %v668_v34, %v640_v46  ;;  %v669_v51 = vadd.f32 %v665_v8, %v661_v37  ;;  %v627_v45 = vpop.permute.xlu0 %626  ;;  %v629_v15 = vpop.permute.xlu1 %628  ;;  %v670_v0 = vadd.f32 %v666_v40, %v662_v42  ;;  %v671_v38 = vadd.f32 %v667_v11, %v663_v49  ;;  %v689_v49 = vld [vmem:[%s2096_s4] sm:$0xff] }
 0x273   :  { %v632_v7 = vsel %vm630_vm8, %v625_v14, %v627_v45  ;;  %v631_v5 = vsel %vm630_vm8, %v627_v45, %v629_v15  ;;  %v634_v21 = vsel %vm630_vm8, %v629_v15, %v623_v25  ;;  %v692_v45 = vld [vmem:[%s2096_s4 + $0x18] sm:$0xff]  ;;  %v693_v15 = vld [vmem:[%s2096_s4 + $0x20] sm:$0xff] }
 0x274   :  { %v641_v12 = vmul.f32 %v1807_v44, %v632_v7  ;;  %v642_v39 = vmul.f32 %v1809_v43, %v631_v5  ;;  %v643_v50 = vmul.f32 %v1811_v13, %v634_v21  ;;  %v676_v55 = vmax.f32 %v672_v10, 0.0  ;;  %v690_v10 = vld [vmem:[%s2096_s4 + $0x8] sm:$0xff]  ;;  %v696_v5 = vld [vmem:[%s2096_s4 + $0x38] sm:$0xff]  ;;  %v697_v21 = vld [vmem:[%s2096_s4 + $0x40] sm:$0xff] }
 0x275   :  { %v694_v7 = vld [vmem:[%s2096_s4 + $0x28] sm:$0xff] }
 0x276   :  { %v673_v22 = vadd.f32 %v669_v51, %v641_v12  ;;  %v674_v63 = vadd.f32 %v670_v0, %v642_v39  ;;  %v675_v19 = vadd.f32 %v671_v38, %v643_v50  ;;  %v1823_v18 = vadd.f32 %v676_v55, %v1487_v3  ;;  %v688_v3 = vld [vmem:[%s2095_s3] sm:$0xff]  ;;  %v691_v51 = vld [vmem:[%s2096_s4 + $0x10] sm:$0xff] }
 0x277   :  { %v695_v0 = vld [vmem:[%s2096_s4 + $0x30] sm:$0xff] }
 0x278   :  { %v677_v9 = vmax.f32 %v673_v22, 0.0  ;;  %v678_v27 = vmax.f32 %v674_v63, 0.0  ;;  %v679_v23 = vmax.f32 %v675_v19, 0.0  ;;  %v2111_v34 = vmax.f32 %v1823_v18, 0.0 }
 0x27a   :  { %v1826_v30 = vadd.f32 %v678_v27, %v1494_v4  ;;  %v1829_v57 = vadd.f32 %v677_v9, %v1477_v1  ;;  %v1832_v25 = vadd.f32 %v679_v23, %v1482_v2  ;;  %v2123_v1 = vmov 0.0  }
 0x27c   :  { %2121 = vst [vmem:[#allocation15_spill] sm:$0xff] %v1826_v30  ;;  %2122 = vst [vmem:[#allocation16_spill] sm:$0xff] %v1832_v25  ;;  %v2110_v14 = vmax.f32 %v1829_v57, 0.0  ;;  %v2108_v36 = vmax.f32 %v1832_v25, 0.0  ;;  %v2109_v37 = vmax.f32 %v1826_v30, 0.0 }
 0x27e   :  { %701 = vmatprep.subr.mxu0 %v2110_v14  ;;  %772 = vmatprep.subr.mxu1 %v2108_v36 }
 0x27f   :  { %702 = vmatpush1.msra.mxu0 %v2111_v34  ;;  %773 = vmatpush1.msra.mxu1 %v2109_v37 }
 0x280   :  { %1327 = vmatmul.mubr.msk.f32.vlgmr.msra.gmra.mrb[20].mxu0 %vm52_vm0, %v688_v3  ;;  %1328 = vmatmul.mubr.msk.f32.vlgmr.msra.gmra.mrb[20].mxu1 %vm52_vm0, %v688_v3 }
 0x281   :  { %938 = vmatprep.mubr.f32.mxu0 %v2123_v1  ;;  %1057 = vmatprep.mubr.f32.mxu1 %v2123_v1 }
 0x353   :  { %v767_v2 = vpop.f32.mrb[20].mxu0  ;;  %v838_v4 = vpop.f32.mrb[20].mxu1 }
 0x354   :  { %v769_v41 = vpop.f32.mrb[21].mxu0  ;;  %v845_v8 = vmax.f32 %v838_v4, 0.0  ;;  %v840_v40 = vpop.f32.mrb[21].mxu1  ;;  %v843_v42 = vmax.f32 %v767_v2, 0.0 }
 0x355   :  { %v844_v11 = vmax.f32 %v769_v41, 0.0  ;;  %v846_v46 = vmax.f32 %v840_v40, 0.0 }
 0x357   :  { %874 = vmatprep.subr.mxu0 %v844_v11  ;;  %993 = vmatprep.subr.mxu1 %v846_v46 }
 0x358   :  { %875 = vmatpush1.msra.mxu0 %v843_v42  ;;  %994 = vmatpush1.msra.mxu1 %v845_v8 }
 0x359   :  { %1329 = vmatmul.mubr.msk.f32.vlgmr.msra.gmra.mrb[22].mxu0 %vm52_vm0, %v689_v49  ;;  %1338 = vmatmul.mubr.msk.f32.vlgmr.msra.gmra.mrb[22].mxu1 %vm52_vm0, %v689_v49 }
 0x35a   :  { %944 = vmatprep.mubr.f32.mxu0 %v2123_v1  ;;  %1063 = vmatprep.mubr.f32.mxu1 %v2123_v1 }
 0x35d   :  { %1330 = vmatmul.mubr.msk.f32.gmra.mrb[24].mxu0 %vm52_vm0, %v690_v10  ;;  %1339 = vmatmul.mubr.msk.f32.gmra.mrb[24].mxu1 %vm52_vm0, %v690_v10 }
 0x35e   :  { %950 = vmatprep.mubr.f32.mxu0 %v2123_v1  ;;  %1069 = vmatprep.mubr.f32.mxu1 %v2123_v1 }
 0x361   :  { %1331 = vmatmul.mubr.msk.f32.gmra.mrb[26].mxu0 %vm52_vm0, %v691_v51  ;;  %1340 = vmatmul.mubr.msk.f32.gmra.mrb[26].mxu1 %vm52_vm0, %v691_v51 }
 0x362   :  { %956 = vmatprep.mubr.f32.mxu0 %v2123_v1  ;;  %1075 = vmatprep.mubr.f32.mxu1 %v2123_v1 }
 0x365   :  { %1332 = vmatmul.mubr.msk.f32.gmra.mrb[28].mxu0 %vm52_vm0, %v692_v45  ;;  %1341 = vmatmul.mubr.msk.f32.gmra.mrb[28].mxu1 %vm52_vm0, %v692_v45 }
 0x366   :  { %962 = vmatprep.mubr.f32.mxu0 %v2123_v1  ;;  %1081 = vmatprep.mubr.f32.mxu1 %v2123_v1 }
 0x369   :  { %1333 = vmatmul.mubr.msk.f32.gmra.mrb[30].mxu0 %vm52_vm0, %v693_v15  ;;  %1342 = vmatmul.mubr.msk.f32.gmra.mrb[30].mxu1 %vm52_vm0, %v693_v15 }
 0x36a   :  { %968 = vmatprep.mubr.f32.mxu0 %v2123_v1  ;;  %1087 = vmatprep.mubr.f32.mxu1 %v2123_v1 }
 0x36d   :  { %1334 = vmatmul.mubr.msk.f32.gmra.mrb[32].mxu0 %vm52_vm0, %v694_v7  ;;  %1343 = vmatmul.mubr.msk.f32.gmra.mrb[32].mxu1 %vm52_vm0, %v694_v7 }
 0x36e   :  { %974 = vmatprep.mubr.f32.mxu0 %v2123_v1  ;;  %1093 = vmatprep.mubr.f32.mxu1 %v2123_v1 }
 0x371   :  { %1335 = vmatmul.mubr.msk.f32.gmra.mrb[34].mxu0 %vm52_vm0, %v695_v0  ;;  %1344 = vmatmul.mubr.msk.f32.gmra.mrb[34].mxu1 %vm52_vm0, %v695_v0 }
 0x372   :  { %980 = vmatprep.mubr.f32.mxu0 %v2123_v1  ;;  %1099 = vmatprep.mubr.f32.mxu1 %v2123_v1 }
 0x375   :  { %1336 = vmatmul.mubr.msk.f32.gmra.mrb[36].mxu0 %vm52_vm0, %v696_v5  ;;  %1345 = vmatmul.mubr.msk.f32.gmra.mrb[36].mxu1 %vm52_vm0, %v696_v5 }
 0x376   :  { %986 = vmatprep.mubr.f32.mxu0 %v2123_v1  ;;  %1105 = vmatprep.mubr.f32.mxu1 %v2123_v1 }
 0x379   :  { %1337 = vmatmul.mubr.msk.f32.gmra.mrb[38].mxu0 %vm52_vm0, %v697_v21  ;;  %1346 = vmatmul.mubr.msk.f32.gmra.mrb[38].mxu1 %vm52_vm0, %v697_v21 }
 0x42c   :  { %v940_v12 = vpop.f32.mrb[22].mxu0  ;;  %v1059_v38 = vpop.f32.mrb[22].mxu1 }
 0x42d   :  { %1112 = vrot.lane.b32.xlu0 %v940_v12, %s1416_s13  ;;  %v942_v39 = vpop.f32.mrb[23].mxu0  ;;  %v1061_v50 = vpop.f32.mrb[23].mxu1 }
 0x42e   :  { %1114 = vrot.lane.b32.xlu1 %v942_v39, %s1416_s13 }
 0x430   :  { %v946_v55 = vpop.f32.mrb[24].mxu0  ;;  %v1065_v22 = vpop.f32.mrb[24].mxu1 }
 0x431   :  { %1116 = vrot.lane.b32.xlu0 %v1059_v38, %s1416_s13  ;;  %v948_v63 = vpop.f32.mrb[25].mxu0  ;;  %v1067_v19 = vpop.f32.mrb[25].mxu1 }
 0x432   :  { %1118 = vrot.lane.b32.xlu1 %v1061_v50, %s1416_s13 }
 0x434   :  { %v952_v9 = vpop.f32.mrb[26].mxu0  ;;  %v1071_v27 = vpop.f32.mrb[26].mxu1 }
 0x435   :  { %1128 = vrot.lane.b32.xlu0 %v946_v55, %s1417_s2  ;;  %v954_v23 = vpop.f32.mrb[27].mxu0  ;;  %v1073_v3 = vpop.f32.mrb[27].mxu1 }
 0x436   :  { %1130 = vrot.lane.b32.xlu1 %v948_v63, %s1417_s2 }
 0x438   :  { %v958_v1 = vpop.f32.mrb[28].mxu0  ;;  %v1077_v2 = vpop.f32.mrb[28].mxu1 }
 0x439   :  { %1132 = vrot.lane.b32.xlu0 %v1065_v22, %s1417_s2  ;;  %v960_v4 = vpop.f32.mrb[29].mxu0  ;;  %v1079_v41 = vpop.f32.mrb[29].mxu1 }
 0x43a   :  { %1134 = vrot.lane.b32.xlu1 %v1067_v19, %s1417_s2  ;;  %s1424_s2 = smov [#allocation5]  }
 0x43c   :  { %v1922_v8 = vpop.f32.mrb[30].mxu0  ;;  %v1924_v40 = vpop.f32.mrb[30].mxu1 }
 0x43d   :  { %1144 = vrot.lane.b32.xlu0 %v952_v9, %s1418_s14  ;;  %v1927_v11 = vpop.f32.mrb[31].mxu0  ;;  %v1929_v46 = vpop.f32.mrb[31].mxu1 }
 0x43e   :  { %1146 = vrot.lane.b32.xlu1 %v954_v23, %s1418_s14 }
 0x440   :  { %v970_v42 = vpop.f32.mrb[32].mxu0  ;;  %v1089_v49 = vpop.f32.mrb[32].mxu1 }
 0x441   :  { %1148 = vrot.lane.b32.xlu0 %v1071_v27, %s1418_s14  ;;  %v972_v10 = vpop.f32.mrb[33].mxu0  ;;  %v1091_v51 = vpop.f32.mrb[33].mxu1 }
 0x442   :  { %1150 = vrot.lane.b32.xlu1 %v1073_v3, %s1418_s14  ;;  %s1298_s14 = sshll.u32 %s1424_s2, 4  ;;  %s1299_s14 = int_to_ptr.vmem [resolvable:$true] %s1298_s14 }
 0x443   :  { %s1386_s1 = scalar_lea.vmem %s1299_s14, 512  ;;  %p1391_p9 = scmp.lt.s32.totalorder %s1299_s14, %s1299_s14 }
 0x444   :  { %v976_v45 = vpop.f32.mrb[34].mxu0  ;;  %v1095_v15 = vpop.f32.mrb[34].mxu1  ;;  %p1387_p8 = scmp.ne.s32.totalorder %s1299_s14, %s1386_s1  ;;  %p1392_p10 = scmp.lt.s32.totalorder %s1386_s1, %s1386_s1 }
 0x445   :  { %1160 = vrot.lane.b32.xlu0 %v958_v1, %s1419_s15  ;;  %v978_v7 = vpop.f32.mrb[35].mxu0  ;;  %v1097_v0 = vpop.f32.mrb[35].mxu1 }
 0x446   :  { %1162 = vrot.lane.b32.xlu1 %v960_v4, %s1419_s15  ;;  %p1393_p11 = por %p1392_p10, %p1391_p9 }
 0x448   :  { %v982_v5 = vpop.f32.mrb[36].mxu0  ;;  %v1101_v21 = vpop.f32.mrb[36].mxu1  ;;  %p1394_p12 = pnand %p1393_p11, %p1387_p8 }
 0x449   :  { %1164 = vrot.lane.b32.xlu0 %v1077_v2, %s1419_s15  ;;  %v984_v12 = vpop.f32.mrb[37].mxu0  ;;  %v1103_v38 = vpop.f32.mrb[37].mxu1 }
 0x44a   :  { %1166 = vrot.lane.b32.xlu1 %v1079_v41, %s1419_s15 }
 0x44c   :  { %v988_v39 = vpop.f32.mrb[38].mxu0  ;;  %v1107_v50 = vpop.f32.mrb[38].mxu1 }
 0x44d   :  { %1176 = vrot.lane.b32.xlu0 %v970_v42, %s1420_s16  ;;  %v990_v55 = vpop.f32.mrb[39].mxu0  ;;  %v1109_v22 = vpop.f32.mrb[39].mxu1 }
 0x44e   :  { %1178 = vrot.lane.b32.xlu1 %v972_v10, %s1420_s16 }
 0x451   :  { %1180 = vrot.lane.b32.xlu0 %v1089_v49, %s1420_s16 }
 0x452   :  { %1182 = vrot.lane.b32.xlu1 %v1091_v51, %s1420_s16 }
 0x455   :  { %1192 = vrot.lane.b32.xlu0 %v976_v45, %s1421_s5 }
 0x456   :  { %1194 = vrot.lane.b32.xlu1 %v978_v7, %s1421_s5 }
 0x459   :  { %1196 = vrot.lane.b32.xlu0 %v1095_v15, %s1421_s5 }
 0x45a   :  { %1198 = vrot.lane.b32.xlu1 %v1097_v0, %s1421_s5 }
 0x45d   :  { %1208 = vrot.lane.b32.xlu0 %v982_v5, %s1422_s17 }
 0x45e   :  { %1210 = vrot.lane.b32.xlu1 %v984_v12, %s1422_s17 }
 0x461   :  { %1212 = vrot.lane.b32.xlu0 %v1101_v21, %s1422_s17 }
 0x462   :  { %1214 = vrot.lane.b32.xlu1 %v1103_v38, %s1422_s17 }
 0x465   :  { %1224 = vrot.lane.b32.xlu0 %v988_v39, %s1423_s18 }
 0x466   :  { %1226 = vrot.lane.b32.xlu1 %v990_v55, %s1423_s18 }
 0x469   :  { %1228 = vrot.lane.b32.xlu0 %v1107_v50, %s1423_s18 }
 0x46a   :  { %1230 = vrot.lane.b32.xlu1 %v1109_v22, %s1423_s18 }
 0x49f   :  { %v1113_v63 = vpop.permute.xlu0 %1112 }
 0x4a0   :  { %v1115_v19 = vpop.permute.xlu1 %1114 }
 0x4a1   :  { %v1122_v38 = vsel %vm477_vm2, %v1113_v63, %v1115_v19 }
 0x4a2   :  { %v1125_v34 = vmul.f32 %v1122_v38, %v1628_v24 }
 0x4a3   :  { %v1117_v9 = vpop.permute.xlu0 %1116 }
 0x4a4   :  { %v1119_v27 = vpop.permute.xlu1 %1118  ;;  %v1121_v39 = vsel %vm477_vm2, %v1115_v19, %v1117_v9 }
 0x4a5   :  { %v1123_v50 = vsel %vm477_vm2, %v1119_v27, %v1113_v63  ;;  %v1120_v22 = vsel %vm477_vm2, %v1117_v9, %v1119_v27  ;;  %v1126_v19 = vmul.f32 %v1121_v39, %v1650_v35 }
 0x4a6   :  { %v1124_v30 = vmul.f32 %v1123_v50, %v1633_v26  ;;  %v1976_v9 = vmul.f32 %v1120_v22, %v1646_v33  ;;  %v2125_v50 = vld [vmem:[#allocation9_spill] sm:$0xff] }
 0x4a7   :  { %v1129_v23 = vpop.permute.xlu0 %1128 }
 0x4a8   :  { %v1131_v3 = vpop.permute.xlu1 %1130 }
 0x4a9   :  { %v1138_v21 = vsel %vm498_vm1, %v1129_v23, %v1131_v3 }
 0x4aa   :  { %v1141_v36 = vmul.f32 %v1138_v21, %v1620_v20 }
 0x4ab   :  { %v1133_v1 = vpop.permute.xlu0 %1132 }
 0x4ac   :  { %v1135_v2 = vpop.permute.xlu1 %1134  ;;  %v1137_v55 = vsel %vm498_vm1, %v1131_v3, %v1133_v1 }
 0x4ad   :  { %v1139_v37 = vsel %vm498_vm1, %v1135_v2, %v1129_v23  ;;  %v1142_v63 = vmul.f32 %v1137_v55, %v1638_v29  ;;  %v1136_v20 = vsel %vm498_vm1, %v1133_v1, %v1135_v2  ;;  %v1983_v23 = vadd.f32 %v1141_v36, %v1125_v34 }
 0x4ae   :  { %v1140_v27 = vmul.f32 %v1139_v37, %v1642_v31 }
 0x4af   :  { %v1145_v4 = vpop.permute.xlu0 %1144  ;;  %v1242_v2 = vadd.f32 %v1142_v63, %v1126_v19  ;;  %v2126_v19 = vld [vmem:[#allocation10_spill] sm:$0xff] }
 0x4b0   :  { %v1147_v41 = vpop.permute.xlu1 %1146  ;;  %v1240_v21 = vadd.f32 %v1140_v27, %v1124_v30 }
 0x4b1   :  { %v1154_v26 = vsel %vm520_vm4, %v1145_v4, %v1147_v41 }
 0x4b3   :  { %v1149_v42 = vpop.permute.xlu0 %1148 }
 0x4b4   :  { %v1151_v49 = vpop.permute.xlu1 %1150  ;;  %v1153_v29 = vsel %vm520_vm4, %v1147_v41, %v1149_v42 }
 0x4b5   :  { %v1152_v1 = vsel %vm520_vm4, %v1149_v42, %v1151_v49  ;;  %v1155_v31 = vsel %vm520_vm4, %v1151_v49, %v1145_v4  ;;  %v1157_v42 = vmul.f32 %v1154_v26, %v1678_v54  ;;  %v1158_v38 = vmul.f32 %v1153_v29, %v1682_v56  ;;  %v2124_v49 = vld [vmem:[#allocation8_spill] sm:$0xff] }
 0x4b6   :  { %v1159_v39 = vmul.f32 %v1152_v1, %v2124_v49 }
 0x4b7   :  { %v1161_v10 = vpop.permute.xlu0 %1160 }
 0x4b8   :  { %v1163_v51 = vpop.permute.xlu1 %1162 }
 0x4b9   :  { %v1170_v3 = vsel %vm542_vm3, %v1161_v10, %v1163_v51 }
 0x4ba   :  { %v1173_v37 = vmul.f32 %v1170_v3, %v1664_v47  ;;  %v1156_v47 = vmul.f32 %v1155_v31, %v1686_v58 }
 0x4bb   :  { %v1165_v45 = vpop.permute.xlu0 %1164 }
 0x4bc   :  { %v1167_v15 = vpop.permute.xlu1 %1166  ;;  %v1169_v24 = vsel %vm542_vm3, %v1163_v51, %v1165_v45  ;;  %v1143_v51 = vmul.f32 %v1136_v20, %v1674_v52  ;;  %v1245_v22 = vadd.f32 %v1173_v37, %v1157_v42  ;;  %v2127_v20 = vld [vmem:[#allocation11_spill] sm:$0xff] }
 0x4bd   :  { %v1171_v33 = vsel %vm542_vm3, %v1167_v15, %v1161_v10  ;;  %v1174_v41 = vmul.f32 %v1169_v24, %v1690_v60  ;;  %v1168_v10 = vsel %vm542_vm3, %v1165_v45, %v1167_v15 }
 0x4be   :  { %v1172_v4 = vmul.f32 %v1171_v33, %v1700_v6  ;;  %v1175_v45 = vmul.f32 %v1168_v10, %v2126_v19  ;;  %v2128_v33 = vld [vmem:[#allocation12_spill] sm:$0xff]  ;;  %v1243_v19 = vadd.f32 %v1143_v51, %v1976_v9 }
 0x4bf   :  { %v1177_v7 = vpop.permute.xlu0 %1176  ;;  %v1246_v30 = vadd.f32 %v1174_v41, %v1158_v38 }
 0x4c0   :  { %v1179_v0 = vpop.permute.xlu1 %1178  ;;  %v1244_v3 = vadd.f32 %v1172_v4, %v1156_v47  ;;  %v1247_v42 = vadd.f32 %v1175_v45, %v1159_v39 }
 0x4c1   :  { %v1186_v36 = vsel %vm564_vm5, %v1177_v7, %v1179_v0 }
 0x4c2   :  { %v1188_v55 = vmul.f32 %v1186_v36, %v2125_v50  ;;  %v1256_v38 = vadd.f32 %v1244_v3, %v1240_v21 }
 0x4c3   :  { %v1181_v5 = vpop.permute.xlu0 %1180 }
 0x4c4   :  { %v1183_v12 = vpop.permute.xlu1 %1182  ;;  %v1185_v54 = vsel %vm564_vm5, %v1179_v0, %v1181_v5 }
 0x4c5   :  { %v1184_v56 = vsel %vm564_vm5, %v1181_v5, %v1183_v12  ;;  %v1187_v58 = vsel %vm564_vm5, %v1183_v12, %v1177_v7  ;;  %v1248_v5 = vadd.f32 %v1188_v55, %v1922_v8  ;;  %v1189_v26 = vmul.f32 %v1185_v54, %v1738_v48 }
 0x4c6   :  { %v1190_v7 = vmul.f32 %v1184_v56, %v1744_v53  ;;  %v1191_v29 = vmul.f32 %v1187_v58, %v1750_v61  ;;  %v1257_v54 = vadd.f32 %v1245_v22, %v1983_v23  ;;  %v1258_v56 = vadd.f32 %v1246_v30, %v1242_v2 }
 0x4c7   :  { %v1193_v14 = vpop.permute.xlu0 %1192  ;;  %v1249_v4 = vadd.f32 %v1189_v26, %v1927_v11 }
 0x4c8   :  { %v1195_v25 = vpop.permute.xlu1 %1194  ;;  %v1251_v50 = vadd.f32 %v1191_v29, %v1929_v46  ;;  %v1360_v29 = vld [vmem:[%s2092_s0] sm:$0xff] }
 0x4c9   :  { %v1202_v52 = vsel %vm586_vm6, %v1193_v14, %v1195_v25 }
 0x4ca   :  { %v1204_v27 = vmul.f32 %v1202_v52, %v2127_v20 }
 0x4cb   :  { %v1197_v35 = vpop.permute.xlu0 %1196 }
 0x4cc   :  { %v1199_v34 = vpop.permute.xlu1 %1198  ;;  %v1201_v15 = vsel %vm586_vm6, %v1195_v25, %v1197_v35 }
 0x4cd   :  { %v1200_v0 = vsel %vm586_vm6, %v1197_v35, %v1199_v34  ;;  %v1203_v25 = vsel %vm586_vm6, %v1199_v34, %v1193_v14  ;;  %v1205_v1 = vmul.f32 %v1201_v15, %v2128_v33  ;;  %v2130_v14 = vld [vmem:[#allocation14_spill] sm:$0xff]  ;;  %v2133_v33 = vld [vmem:[#allocation15_spill] sm:$0xff] }
 0x4ce   :  { %v1207_v34 = vmul.f32 %v1203_v25, %v2130_v14  ;;  %v1363_v14 = vld [vmem:[%s2092_s0 + $0x18] sm:$0xff] }
 0x4cf   :  { %v1209_v60 = vpop.permute.xlu0 %1208 }
 0x4d0   :  { %v1211_v6 = vpop.permute.xlu1 %1210 }
 0x4d1   :  { %v1218_v63 = vsel %vm608_vm7, %v1209_v60, %v1211_v6 }
 0x4d2   :  { %v1220_v24 = vmul.f32 %v1218_v63, %v1735_v16  ;;  %v2129_v16 = vld [vmem:[#allocation13_spill] sm:$0xff] }
 0x4d3   :  { %v1213_v12 = vpop.permute.xlu0 %1212  ;;  %v1206_v36 = vmul.f32 %v1200_v0, %v2129_v16 }
 0x4d4   :  { %v1252_v31 = vadd.f32 %v1220_v24, %v1204_v27  ;;  %v1217_v35 = vsel %vm608_vm7, %v1211_v6, %v1213_v12  ;;  %v1215_v37 = vpop.permute.xlu1 %1214  ;;  %v1259_v6 = vadd.f32 %v1247_v42, %v1243_v19  ;;  %v2131_v27 = vmax.f32 %v1823_v18, 0.0 }
 0x4d5   :  { %v1221_v8 = vmul.f32 %v1217_v35, %v1776_v62  ;;  %v1216_v48 = vsel %vm608_vm7, %v1213_v12, %v1215_v37  ;;  %v1219_v53 = vsel %vm608_vm7, %v1215_v37, %v1209_v60  ;;  %v1250_v62 = vadd.f32 %v1190_v7, %v1924_v40 }
 0x4d6   :  { %v1260_v61 = vadd.f32 %v1252_v31, %v1248_v5  ;;  %v1222_v41 = vmul.f32 %v1216_v48, %v1778_v28  ;;  %v1223_v10 = vmul.f32 %v1219_v53, %v1780_v32  ;;  %v2132_v12 = vmax.f32 %v1829_v57, 0.0  ;;  %v2135_v31 = vld [vmem:[#allocation16_spill] sm:$0xff]  ;;  %v1361_v57 = vld [vmem:[%s2092_s0 + $0x8] sm:$0xff]  ;;  %v1362_v48 = vld [vmem:[%s2092_s0 + $0x10] sm:$0xff] }
 0x4d7   :  { %v1253_v47 = vadd.f32 %v1221_v8, %v1205_v1  ;;  %v1225_v49 = vpop.permute.xlu0 %1224  ;;  %v2136_v18 = vmax.f32 %v2135_v31, 0.0 }
 0x4d8   :  { %v1254_v55 = vadd.f32 %v1222_v41, %v1206_v36  ;;  %v1255_v52 = vadd.f32 %v1223_v10, %v1207_v34  ;;  %v1227_v60 = vpop.permute.xlu1 %1226  ;;  %v1264_v11 = vadd.f32 %v1260_v61, %v1256_v38 }
 0x4d9   :  { %v1261_v28 = vadd.f32 %v1253_v47, %v1249_v4  ;;  %v1234_v32 = vsel %vm630_vm8, %v1225_v49, %v1227_v60 }
 0x4da   :  { %v1262_v21 = vadd.f32 %v1254_v55, %v1250_v62  ;;  %v1263_v39 = vadd.f32 %v1255_v52, %v1251_v50  ;;  %v1236_v45 = vmul.f32 %v1234_v32, %v1797_v59 }
 0x4db   :  { %v1229_v40 = vpop.permute.xlu0 %1228  ;;  %v1265_v15 = vadd.f32 %v1261_v28, %v1257_v54 }
 0x4dc   :  { %v1268_v46 = vadd.f32 %v1264_v11, %v1236_v45  ;;  %v1233_v58 = vsel %vm630_vm8, %v1227_v60, %v1229_v40  ;;  %v1231_v9 = vpop.permute.xlu1 %1230  ;;  %v1266_v51 = vadd.f32 %v1262_v21, %v1258_v56  ;;  %v1267_v59 = vadd.f32 %v1263_v39, %v1259_v6 }
 0x4dd   :  { %v1237_v23 = vmul.f32 %v1233_v58, %v1807_v44  ;;  %v1232_v22 = vsel %vm630_vm8, %v1229_v40, %v1231_v9  ;;  %v1235_v63 = vsel %vm630_vm8, %v1231_v9, %v1225_v49 }
 0x4de   :  { %v1272_v3 = vmax.f32 %v1268_v46, 0.0  ;;  %v1238_v2 = vmul.f32 %v1232_v22, %v1809_v43  ;;  %v1239_v30 = vmul.f32 %v1235_v63, %v1811_v13  ;;  %v2134_v13 = vmax.f32 %v2133_v33, 0.0 }
 0x4df   :  { %v1269_v20 = vadd.f32 %v1265_v15, %v1237_v23 }
 0x4e0   :  { %v1276_v0 = vadd.f32 %v1272_v3, %v2131_v27  ;;  %v1270_v24 = vadd.f32 %v1266_v51, %v1238_v2  ;;  %v1271_v5 = vadd.f32 %v1267_v59, %v1239_v30 }
 0x4e1   :  { %v1273_v44 = vmax.f32 %v1269_v20, 0.0 }
 0x4e2   :  { %v1280_v26 = vmax.f32 %v1276_v0, 0.0  ;;  %v1274_v7 = vmax.f32 %v1270_v24, 0.0  ;;  %v1275_v25 = vmax.f32 %v1271_v5, 0.0 }
 0x4e3   :  { %v1277_v17 = vadd.f32 %v1273_v44, %v2132_v12 }
 0x4e4   :  { %v1284_v43 = vadd.f32 %v1360_v29, %v1280_v26  ;;  %v1278_v1 = vadd.f32 %v1274_v7, %v2134_v13  ;;  %v1279_v35 = vadd.f32 %v1275_v25, %v2136_v18 }
 0x4e5   :  { %v1281_v37 = vmax.f32 %v1277_v17, 0.0 }
 0x4e6   :  { %1288 = vst [vmem:[#allocation5] sm:$0xff] %v1284_v43  ;;  %v1282_v16 = vmax.f32 %v1278_v1, 0.0  ;;  %v1283_v36 = vmax.f32 %v1279_v35, 0.0 }
 0x4e7   :  { %v1285_v8 = vadd.f32 %v1361_v57, %v1281_v37 }
 0x4e8   :  { %v1286_v53 = vadd.f32 %v1362_v48, %v1282_v16  ;;  %v1287_v34 = vadd.f32 %v1363_v14, %v1283_v36 }
 0x4e9   :  { %1289 = vst [vmem:[#allocation5 + $0x8] sm:$0xff] %v1285_v8 }
 0x4ea   :  { %1290 = vst [vmem:[#allocation5 + $0x10] sm:$0xff] %v1286_v53  ;;  %1291 = vst [vmem:[#allocation5 + $0x18] sm:$0xff] %v1287_v34 }
 0x4eb   :  { %1397 = shalt.err (!%p1394_p12)
}
 0x4ec   :  { %s1398_s21 = scalar_lea.hbm %s2098_s6, 512 }
 0x4ed   :  { %p1399_p13 = scmp.ne.s32.totalorder %s2098_s6, %s1398_s21  ;;  %p1402_p0 = scmp.lt.u32.totalorder %s1398_s21, %s2098_s6 }
 0x4ef   :  { %p1404_p1 = pnand %p1402_p0, %p1399_p13 }
 0x4f1   :  { %1407 = shalt.err (!%p1404_p1)
}
 0x4f2   :  { %1301 = dma.vmem_to_hbm [thread:$0]  %s1299_s14, 512, %s2098_s6, [#allocation4]  }
 0x4f3   :  { %1410 = dma.done.wait [#allocation4], 512  }
 0x4f4   :  { %1411 = vsyncadd [#allocation4], 4294966784 }
 0x4f5   :  { %1305 = vsyncpa [#allocation3], 1 }
 0x4f6   :  { %1306 = vsyncpa [#allocation4], 1 }

</bundles_post_ra>
